<compile_context>
chip_gen: v6e
topology: v6e:2x2x1
jax: 0.10.0
libtpu: 0.0.40
codegen_flags: <defaults>
</compile_context>

<pallas_src>
import functools

import jax
import jax.numpy as jnp
from jax.experimental import pallas as pl
from jax.experimental.pallas import tpu as pltpu


EMB_SIZE = 64
N_LAYERS = 3
HYPER_LAYERS = 1


def _ncl_kernel(a_ref, e_ref, out_ref, acc_ref):
    """One (i, k) grid step: acc += A[i,k] @ E[k]; fuse layer|mean on last k."""
    i = pl.program_id(0)
    k = pl.program_id(1)
    tm, tk = a_ref.shape
    d = e_ref.shape[1]

    @pl.when(k == 0)
    def _():
        acc_ref[...] = jnp.zeros_like(acc_ref)

    # Matmul operand rows sliced from the VMEM-resident E (cast to A's dtype so
    # the MXU runs a native bf16 x bf16 -> f32 accumulate when A is bf16).
    k0 = pl.multiple_of(k * tk, tk)
    e_k = e_ref[pl.ds(k0, tk), :].astype(a_ref.dtype)
    acc_ref[...] += jnp.dot(a_ref[...], e_k, preferred_element_type=jnp.float32)

    @pl.when(k == pl.num_programs(1) - 1)
    def _():
        i0 = pl.multiple_of(i * tm, tm)
        e_i = e_ref[pl.ds(i0, tm), :].astype(jnp.float32)
        y = acc_ref[...]
        # mean of [E, Y, Y, Y] along the stacked layer axis == (E + 3*Y) / 4
        mean = (e_i + 3.0 * y) * 0.25
        # Fuse [layer | mean] into one lane-dense (tm, 128) store.
        out_ref[...] = jnp.concatenate([y, mean], axis=-1).astype(out_ref.dtype)


def _round_up(x, m):
    return (x + m - 1) // m * m


@functools.partial(jax.jit, static_argnames=("tm", "tk", "adj_dtype"))
def ncl_propagate(norm_adj, ego_embeddings, *, tm=512, tk=1024,
                  adj_dtype=jnp.bfloat16):
    """Returns (layer_embeddings = A @ E, lightgcn_mean = (E + 3*A@E)/4)."""
    n, d = ego_embeddings.shape
    assert norm_adj.shape == (n, n)
    assert (tm & (tm - 1)) == 0 and (tk & (tk - 1)) == 0, \
        "tm / tk must be powers of two"

    # Clamp tiles for small problems; because tiles are powers of two, padding n
    # to a multiple of max(tm, tk) makes it a multiple of both.
    tm = max(8, min(tm, pl.next_power_of_2(max(n, 8))))
    tk = max(128, min(tk, pl.next_power_of_2(max(n, 128))))
    n_pad = _round_up(n, max(tm, tk))
    pad = n_pad - n

    a = jnp.pad(norm_adj, ((0, pad), (0, pad))).astype(adj_dtype)
    e = jnp.pad(ego_embeddings, ((0, pad), (0, 0)))

    grid = (n_pad // tm, n_pad // tk)

    a_item = jnp.dtype(adj_dtype).itemsize
    e_item = jnp.dtype(ego_embeddings.dtype).itemsize
    vmem_bytes = (
        2 * n_pad * d * e_item          # resident E (double-buffer worst case)
        + 2 * tm * tk * a_item          # A tiles, double-buffered
        + 2 * tm * 2 * d * e_item       # fused output tiles, double-buffered
        + tm * d * 4                    # f32 accumulator scratch
        + (2 << 20)                     # compiler-internal slack
    )
    vmem_limit = int(min(max(vmem_bytes, 32 << 20), 64 << 20))

    fused = pl.pallas_call(
        _ncl_kernel,
        out_shape=jax.ShapeDtypeStruct((n_pad, 2 * d), ego_embeddings.dtype),
        grid_spec=pltpu.PrefetchScalarGridSpec(
            num_scalar_prefetch=0,
            grid=grid,
            in_specs=[
                pl.BlockSpec((tm, tk), lambda i, k: (i, k)),     # A tile (streamed)
                pl.BlockSpec((n_pad, d), lambda i, k: (0, 0)),   # E, VMEM-resident
            ],
            out_specs=pl.BlockSpec((tm, 2 * d), lambda i, k: (i, 0)),
            scratch_shapes=[pltpu.VMEM((tm, d), jnp.float32)],
        ),
        compiler_params=pltpu.CompilerParams(
            dimension_semantics=("parallel", "arbitrary"),
            vmem_limit_bytes=vmem_limit,
        ),
    )(a, e)

    layer = fused[:n, :d]
    mean = fused[:n, d:]
    return layer, mean


def twoloss_ncl_forward(norm_adj, user_embedding, item_embedding,
                        *, adj_dtype=jnp.bfloat16):
    """Pallas implementation of TwolossNCL.forward()."""
    n_users = user_embedding.shape[0]
    ego = jnp.concatenate([user_embedding, item_embedding], axis=0)

    layer_emb, lightgcn_all = ncl_propagate(norm_adj, ego, adj_dtype=adj_dtype)

    # The PyTorch loop runs max(n_layers, hyper_layers*2) = 3 times but never
    # updates ego, so all propagated layers are identical.
    n_prop = max(N_LAYERS, HYPER_LAYERS * 2)
    embeddings_list = [ego] + [layer_emb] * n_prop

    user_all = lightgcn_all[:n_users]
    item_all = lightgcn_all[n_users:]
    return user_all, item_all, embeddings_list


def _xavier_uniform(key, shape):
    fan_in, fan_out = shape[0], shape[1]
    bound = (6.0 / (fan_in + fan_out)) ** 0.5
    return jax.random.uniform(key, shape, jnp.float32, -bound, bound)


if __name__ == "__main__":
    n_users, n_items = 96, 160          # small synthetic sizes
    n_total = n_users + n_items         # 256

    key = jax.random.PRNGKey(0)
    k_u, k_i, k_a = jax.random.split(key, 3)

    # deterministic parameter init (matches nn.init.xavier_uniform_ shapes)
    user_emb = _xavier_uniform(k_u, (n_users, EMB_SIZE))
    item_emb = _xavier_uniform(k_i, (n_items, EMB_SIZE))

    # synthetic symmetric-normalized adjacency (dense stand-in for the sparse
    # norm_adj the module receives)
    raw = jax.random.uniform(k_a, (n_total, n_total), jnp.float32)
    adj = jnp.where(raw > 0.9, raw, 0.0)
    adj = 0.5 * (adj + adj.T)
    deg = jnp.maximum(adj.sum(axis=1), 1e-12)
    d_inv_sqrt = 1.0 / jnp.sqrt(deg)
    norm_adj = adj * d_inv_sqrt[:, None] * d_inv_sqrt[None, :]

    user_all, item_all, emb_list = twoloss_ncl_forward(norm_adj, user_emb, item_emb)
    jax.block_until_ready((user_all, item_all, emb_list))

    # Reference in plain JAX.  The kernel feeds the MXU bf16 operands with f32
    # accumulation, so the reference uses the same bf16-rounded inputs (pass
    # adj_dtype=jnp.float32 to ncl_propagate for exact-f32 PyTorch numerics).
    ego_ref = jnp.concatenate([user_emb, item_emb], axis=0)
    adj_q = norm_adj.astype(jnp.bfloat16).astype(jnp.float32)
    ego_q = ego_ref.astype(jnp.bfloat16).astype(jnp.float32)
    layer_ref = adj_q @ ego_q
    mean_ref = (ego_ref + 3.0 * layer_ref) / 4.0

    assert jnp.allclose(user_all, mean_ref[:n_users], atol=1e-4, rtol=1e-4)
    assert jnp.allclose(item_all, mean_ref[n_users:], atol=1e-4, rtol=1e-4)
    assert jnp.allclose(emb_list[1], layer_ref, atol=1e-4, rtol=1e-4)
    assert jnp.allclose(emb_list[0], ego_ref)
    assert len(emb_list) == 4

    print("KERNEL_OK")
</pallas_src>

<mosaic_0001>
module attributes {stable_mosaic.version = 11 : i64} {
  func.func @_ncl_kernel(%arg0: i32, %arg1: i32, %arg2: memref<256x256xbf16, #tpu.memory_space<vmem>>, %arg3: memref<256x64xf32, #tpu.memory_space<vmem>>, %arg4: memref<256x128xf32, #tpu.memory_space<vmem>>, %arg5: memref<256x64xf32, #tpu.memory_space<vmem>>) attributes {dimension_semantics = [#tpu.dimension_semantics<parallel>, #tpu.dimension_semantics<arbitrary>], iteration_bounds = array<i64: 1, 1>, scalar_prefetch = 0 : i64, scratch_operands = 1 : i64, tpu.core_type = #tpu.core_type<tc>, window_params = [{transform_indices = @transform_0, window_bounds = array<i64: 256, 256>}, {pipeline_mode = #tpu.pipeline_mode<synchronous>, transform_indices = @transform_1, window_bounds = array<i64: 256, 64>}, {transform_indices = @transform_2, window_bounds = array<i64: 256, 128>}]} {
    %c0_i32 = arith.constant 0 : i32
    %0 = arith.cmpi eq, %arg1, %c0_i32 : i32
    %1 = arith.extui %0 : i1 to i32
    %c0_i32_0 = arith.constant 0 : i32
    %2 = arith.cmpi ne, %1, %c0_i32_0 : i32
    scf.if %2 {
      %cst_9 = arith.constant 0.000000e+00 : f32
      %16 = vector.broadcast %cst_9 : f32 to vector<256x64xf32>
      %c0_10 = arith.constant 0 : index
      %c0_11 = arith.constant 0 : index
      %17 = vector.load %arg5[%c0_10, %c0_11] : memref<256x64xf32, #tpu.memory_space<vmem>>, vector<256x64xf32>
      tpu.vector_store %arg5[%c0_10, %c0_11], %16 {strides = array<i32>} : memref<256x64xf32, #tpu.memory_space<vmem>>, vector<256x64xf32>,
    } else {
    }
    %c256_i32 = arith.constant 256 : i32
    %3 = arith.muli %arg1, %c256_i32 : i32
    %4 = tpu.assume_multiple %3, 256 : i32
    %5 = arith.index_cast %4 : i32 to index
    %c0 = arith.constant 0 : index
    %6 = vector.load %arg3[%5, %c0] : memref<256x64xf32, #tpu.memory_space<vmem>>, vector<256x64xf32>
    %7 = arith.truncf %6 : vector<256x64xf32> to vector<256x64xbf16>
    %c0_1 = arith.constant 0 : index
    %c0_2 = arith.constant 0 : index
    %8 = vector.load %arg5[%c0_1, %c0_2] : memref<256x64xf32, #tpu.memory_space<vmem>>, vector<256x64xf32>
    %c0_3 = arith.constant 0 : index
    %c0_4 = arith.constant 0 : index
    %9 = vector.load %arg2[%c0_3, %c0_4] : memref<256x256xbf16, #tpu.memory_space<vmem>>, vector<256x256xbf16>
    %cst = arith.constant dense<0.000000e+00> : vector<256x64xf32>
    %10 = tpu.matmul %9, %7, %cst {dimension_numbers = #tpu.dot_dimension_numbers<[1], [0], [0], [1], [0, 0, 1, 1], [], []>} : vector<256x256xbf16>, vector<256x64xbf16>, vector<256x64xf32> -> vector<256x64xf32>
    %11 = arith.addf %8, %10 : vector<256x64xf32>
    %c0_5 = arith.constant 0 : index
    %c0_6 = arith.constant 0 : index
    %12 = vector.load %arg5[%c0_5, %c0_6] : memref<256x64xf32, #tpu.memory_space<vmem>>, vector<256x64xf32>
    tpu.vector_store %arg5[%c0_5, %c0_6], %11 {strides = array<i32>} : memref<256x64xf32, #tpu.memory_space<vmem>>, vector<256x64xf32>,
    %c0_i32_7 = arith.constant 0 : i32
    %13 = arith.cmpi eq, %arg1, %c0_i32_7 : i32
    %14 = arith.extui %13 : i1 to i32
    %c0_i32_8 = arith.constant 0 : i32
    %15 = arith.cmpi ne, %14, %c0_i32_8 : i32
    scf.if %15 {
      %c256_i32_9 = arith.constant 256 : i32
      %16 = arith.muli %arg0, %c256_i32_9 : i32
      %17 = tpu.assume_multiple %16, 256 : i32
      %18 = arith.index_cast %17 : i32 to index
      %c0_10 = arith.constant 0 : index
      %19 = vector.load %arg3[%18, %c0_10] : memref<256x64xf32, #tpu.memory_space<vmem>>, vector<256x64xf32>
      %c0_11 = arith.constant 0 : index
      %c0_12 = arith.constant 0 : index
      %20 = vector.load %arg5[%c0_11, %c0_12] : memref<256x64xf32, #tpu.memory_space<vmem>>, vector<256x64xf32>
      %cst_13 = arith.constant 3.000000e+00 : f32
      %21 = vector.broadcast %cst_13 : f32 to vector<256x64xf32>
      %22 = arith.mulf %21, %20 : vector<256x64xf32>
      %23 = arith.addf %19, %22 : vector<256x64xf32>
      %cst_14 = arith.constant 2.500000e-01 : f32
      %24 = vector.broadcast %cst_14 : f32 to vector<256x64xf32>
      %25 = arith.mulf %23, %24 : vector<256x64xf32>
      %26 = tpu.concatenate %20, %25 in 1 : vector<256x64xf32>, vector<256x64xf32> -> vector<256x128xf32>
      %c0_15 = arith.constant 0 : index
      %c0_16 = arith.constant 0 : index
      %27 = vector.load %arg4[%c0_15, %c0_16] : memref<256x128xf32, #tpu.memory_space<vmem>>, vector<256x128xf32>
      tpu.vector_store %arg4[%c0_15, %c0_16], %26 {strides = array<i32>} : memref<256x128xf32, #tpu.memory_space<vmem>>, vector<256x128xf32>,
    } else {
    }
    return
  }
  func.func @transform_0(%arg0: i32, %arg1: i32) -> (i32, i32) {
    %c0_i32 = arith.constant 0 : i32
    return %arg0, %arg1 : i32, i32
  }
  func.func @transform_1(%arg0: i32, %arg1: i32) -> (i32, i32) {
    %c0_i32 = arith.constant 0 : i32
    %c0_i32_0 = arith.constant 0 : i32
    %c0_i32_1 = arith.constant 0 : i32
    return %c0_i32, %c0_i32_0 : i32, i32
  }
  func.func @transform_2(%arg0: i32, %arg1: i32) -> (i32, i32) {
    %c0_i32 = arith.constant 0 : i32
    %c0_i32_0 = arith.constant 0 : i32
    return %arg0, %c0_i32 : i32, i32
  }
}

</mosaic_0001>

<bundles_post_ra>
// kernel: ncl_propagate.1
= control target key start
LH: loop header
LB: loop body
LE: loop exit
PB: predicated region body
PF: predicated region fallthrough
CT: control target
= control target key end

     0   :  { %vm16_vm0 = vcmask 523264   ;;  %s1799_s1 = inlined_call_operand.vmem [shape: f32[256,64], index: 1, kind: input, shape index: {}]   ;;  %s1800_s0 = inlined_call_operand.vmem [shape: bf16[256,256], index: 0, kind: input, shape index: {}]   ;;  %s1801_s2 = inlined_call_operand.vmem [shape: f32[256,128], index: 2, kind: output, shape index: {}]  }
   0x1   :  { %v81_v0 = vld [vmem:[%s1799_s1 + $0xf0] sm:$0xff]  ;;  %v82_v1 = vld [vmem:[%s1799_s1 + $0xf8] sm:$0xff]  ;;  %v79_v5 = vld [vmem:[%s1799_s1 + $0xe0] sm:$0xff] }
   0x2   :  { %v65_v2 = vld [vmem:[%s1799_s1 + $0x70] sm:$0xff]  ;;  %v98_v3 = vpack.c.bf16 %v82_v1, %v81_v0  ;;  %v66_v4 = vld [vmem:[%s1799_s1 + $0x78] sm:$0xff]  ;;  %v80_v6 = vld [vmem:[%s1799_s1 + $0xe8] sm:$0xff] }
   0x3   :  { %v90_v7 = vpack.c.bf16 %v66_v4, %v65_v2  ;;  %v97_v8 = vpack.c.bf16 %v80_v6, %v79_v5  ;;  %v63_v9 = vld [vmem:[%s1799_s1 + $0x60] sm:$0xff]  ;;  %v64_v10 = vld [vmem:[%s1799_s1 + $0x68] sm:$0xff]  ;;  %v77_v11 = vld [vmem:[%s1799_s1 + $0xd0] sm:$0xff] }
   0x4   :  { %942 = vmatprep.subr.bf16.mxu0 %v98_v3  ;;  %1054 = vmatprep.subr.bf16.mxu1 %v98_v3  ;;  %v78_v12 = vld [vmem:[%s1799_s1 + $0xd8] sm:$0xff]  ;;  %v89_v13 = vpack.c.bf16 %v64_v10, %v63_v9  ;;  %v1170_v15 = vld [vmem:[%s1799_s1 + $0x50] sm:$0xff]  ;;  %v1180_v17 = vld [vmem:[%s1799_s1 + $0xc0] sm:$0xff] }
   0x5   :  { %943 = vmatpush3.bf16.msra.mxu0 %v90_v7  ;;  %1062 = vmatpush3.bf16.msra.mxu1 %v90_v7  ;;  %v96_v14 = vpack.c.bf16 %v78_v12, %v77_v11  ;;  %v1175_v16 = vld [vmem:[%s1799_s1 + $0x58] sm:$0xff]  ;;  %v1185_v18 = vld [vmem:[%s1799_s1 + $0xc8] sm:$0xff]  ;;  %v1194_v21 = vld [vmem:[%s1799_s1 + $0x40] sm:$0xff] }
   0x6   :  { %944 = vmatprep.subr.bf16.mxu0 %v97_v8  ;;  %1055 = vmatprep.subr.bf16.mxu1 %v97_v8  ;;  %v88_v19 = vpack.c.bf16 %v1175_v16, %v1170_v15  ;;  %v95_v20 = vpack.c.bf16 %v1185_v18, %v1180_v17  ;;  %v1199_v22 = vld [vmem:[%s1799_s1 + $0x48] sm:$0xff]  ;;  %v1204_v23 = vld [vmem:[%s1799_s1 + $0xb0] sm:$0xff]  ;;  %v1209_v24 = vld [vmem:[%s1799_s1 + $0xb8] sm:$0xff] }
   0x7   :  { %v1214_v25 = vld [vmem:[%s1799_s1 + $0x30] sm:$0xff]  ;;  %v1219_v26 = vld [vmem:[%s1799_s1 + $0x38] sm:$0xff]  ;;  %v1074_v27 = vld [vmem:[%s1800_s0 + $0x4] ss:$8 sps:$4 sm:$0xff]   ;;  %v87_v28 = vpack.c.bf16 %v1199_v22, %v1194_v21  ;;  %v94_v30 = vpack.c.bf16 %v1209_v24, %v1204_v23 }
   0x8   :  { %v1229_v29 = vld [vmem:[%s1799_s1 + $0xa0] sm:$0xff]  ;;  %v1239_v32 = vld [vmem:[%s1799_s1 + $0xa8] sm:$0xff]  ;;  %355 = vmatprep.mubr.bf16.mxu0 %v1074_v27  ;;  %v86_v33 = vpack.c.bf16 %v1219_v26, %v1214_v25  ;;  %v1258_v37 = vld [vmem:[%s1799_s1 + $0x90] sm:$0xff] }
   0x9   :  { %945 = vmatpush3.bf16.msra.mxu0 %v89_v13  ;;  %1063 = vmatpush3.bf16.msra.mxu1 %v89_v13  ;;  %v1077_v31 = vld [vmem:[%s1800_s0 + $0x84] ss:$8 sps:$4 sm:$0xff]   ;;  %v93_v35 = vpack.c.bf16 %v1239_v32, %v1229_v29  ;;  %v1263_v38 = vld [vmem:[%s1799_s1 + $0x98] sm:$0xff]  ;;  %v1270_v40 = vld [vmem:[%s1799_s1 + $0x10] sm:$0xff] }
   0xa   :  { %946 = vmatprep.subr.bf16.mxu0 %v96_v14  ;;  %1056 = vmatprep.subr.bf16.mxu1 %v96_v14  ;;  %v1246_v34 = vld [vmem:[%s1799_s1 + $0x20] sm:$0xff]  ;;  %v1253_v36 = vld [vmem:[%s1799_s1 + $0x28] sm:$0xff]  ;;  %v1275_v41 = vld [vmem:[%s1799_s1 + $0x18] sm:$0xff]  ;;  %v92_v42 = vpack.c.bf16 %v1263_v38, %v1258_v37 }
   0xb   :  { %419 = vmatprep.mubr.bf16.mxu1 %v1077_v31  ;;  %v85_v39 = vpack.c.bf16 %v1253_v36, %v1246_v34  ;;  %v1282_v43 = vld [vmem:[%s1799_s1 + $0x80] sm:$0xff]  ;;  %v1287_v44 = vld [vmem:[%s1799_s1 + $0x88] sm:$0xff]  ;;  %v84_v45 = vpack.c.bf16 %v1275_v41, %v1270_v40  ;;  %v1078_v52 = vld [vmem:[%s1800_s0 + $0x14] ss:$8 sps:$4 sm:$0xff]  }
   0xc   :  { %v1294_v46 = vld [vmem:[%s1799_s1] sm:$0xff]  ;;  %v91_v47 = vpack.c.bf16 %v1287_v44, %v1282_v43  ;;  %v1301_v48 = vld [vmem:[%s1799_s1 + $0x8] sm:$0xff]  ;;  %v1080_v53 = vld [vmem:[%s1800_s0 + $0x94] ss:$8 sps:$4 sm:$0xff]  }
   0xd   :  { %947 = vmatpush3.bf16.msra.mxu0 %v88_v19  ;;  %1064 = vmatpush3.bf16.msra.mxu1 %v88_v19  ;;  %v83_v49 = vpack.c.bf16 %v1301_v48, %v1294_v46  ;;  %v1072_v50 = vld [vmem:[%s1800_s0] ss:$8 sps:$4 sm:$0xff]   ;;  %v1082_v54 = vld [vmem:[%s1800_s0 + $0x10] ss:$8 sps:$4 sm:$0xff]   ;;  %v1084_v56 = vld [vmem:[%s1800_s0 + $0x24] ss:$8 sps:$4 sm:$0xff]  }
   0xe   :  { %948 = vmatprep.subr.bf16.mxu0 %v95_v20  ;;  %1057 = vmatprep.subr.bf16.mxu1 %v95_v20  ;;  %v1075_v51 = vld [vmem:[%s1800_s0 + $0x80] ss:$8 sps:$4 sm:$0xff]   ;;  %v1083_v55 = vld [vmem:[%s1800_s0 + $0x90] ss:$8 sps:$4 sm:$0xff]   ;;  %v1086_v57 = vld [vmem:[%s1800_s0 + $0xa4] ss:$8 sps:$4 sm:$0xff]  }
   0xf   :  { %v1088_v58 = vld [vmem:[%s1800_s0 + $0x20] ss:$8 sps:$4 sm:$0xff]   ;;  %v1090_v60 = vld [vmem:[%s1800_s0 + $0x34] ss:$8 sps:$4 sm:$0xff]   ;;  %v1094_v62 = vld [vmem:[%s1800_s0 + $0x30] ss:$8 sps:$4 sm:$0xff]  }
  0x10   :  { %v1089_v59 = vld [vmem:[%s1800_s0 + $0xa0] ss:$8 sps:$4 sm:$0xff]   ;;  %v1092_v61 = vld [vmem:[%s1800_s0 + $0xb4] ss:$8 sps:$4 sm:$0xff]   ;;  %v1095_v63 = vld [vmem:[%s1800_s0 + $0xb0] ss:$8 sps:$4 sm:$0xff]  }
  0x11   :  { %949 = vmatpush3.bf16.msra.mxu0 %v87_v28  ;;  %1065 = vmatpush3.bf16.msra.mxu1 %v87_v28  ;;  %v1096_v0 = vld [vmem:[%s1800_s0 + $0x44] ss:$8 sps:$4 sm:$0xff]   ;;  %v1100_v2 = vld [vmem:[%s1800_s0 + $0x40] ss:$8 sps:$4 sm:$0xff]   ;;  %v1102_v4 = vld [vmem:[%s1800_s0 + $0x54] ss:$8 sps:$4 sm:$0xff]  }
  0x12   :  { %950 = vmatprep.subr.bf16.mxu0 %v94_v30  ;;  %1058 = vmatprep.subr.bf16.mxu1 %v94_v30  ;;  %v1098_v1 = vld [vmem:[%s1800_s0 + $0xc4] ss:$8 sps:$4 sm:$0xff]   ;;  %v1101_v3 = vld [vmem:[%s1800_s0 + $0xc0] ss:$8 sps:$4 sm:$0xff]   ;;  %v1104_v5 = vld [vmem:[%s1800_s0 + $0xd4] ss:$8 sps:$4 sm:$0xff]  }
  0x13   :  { %v1106_v6 = vld [vmem:[%s1800_s0 + $0x50] ss:$8 sps:$4 sm:$0xff]   ;;  %v1108_v8 = vld [vmem:[%s1800_s0 + $0x64] ss:$8 sps:$4 sm:$0xff]   ;;  %v1112_v10 = vld [vmem:[%s1800_s0 + $0x60] ss:$8 sps:$4 sm:$0xff]  }
  0x14   :  { %v1107_v7 = vld [vmem:[%s1800_s0 + $0xd0] ss:$8 sps:$4 sm:$0xff]   ;;  %v1110_v9 = vld [vmem:[%s1800_s0 + $0xe4] ss:$8 sps:$4 sm:$0xff]   ;;  %v1113_v11 = vld [vmem:[%s1800_s0 + $0xe0] ss:$8 sps:$4 sm:$0xff]  }
  0x15   :  { %951 = vmatpush3.bf16.msra.mxu0 %v86_v33  ;;  %1066 = vmatpush3.bf16.msra.mxu1 %v86_v33  ;;  %v1114_v12 = vld [vmem:[%s1800_s0 + $0x74] ss:$8 sps:$4 sm:$0xff]   ;;  %v1118_v14 = vld [vmem:[%s1800_s0 + $0x70] ss:$8 sps:$4 sm:$0xff]   ;;  %v1120_v20 = vmov 0.0  }
  0x16   :  { %952 = vmatprep.subr.bf16.mxu0 %v93_v35  ;;  %1059 = vmatprep.subr.bf16.mxu1 %v93_v35  ;;  %v1116_v13 = vld [vmem:[%s1800_s0 + $0xf4] ss:$8 sps:$4 sm:$0xff]   ;;  %v1119_v19 = vld [vmem:[%s1800_s0 + $0xf0] ss:$8 sps:$4 sm:$0xff]   ;;  %17 = vst.msk [vmem:[#allocation2] sm:$0xff] %vm16_vm0, %v1120_v20  ;;  %18 = vst.msk [vmem:[#allocation2 + $0x8] sm:$0xff] %vm16_vm0, %v1120_v20 }
  0x17   :  { %19 = vst.msk [vmem:[#allocation2 + $0x10] sm:$0xff] %vm16_vm0, %v1120_v20  ;;  %20 = vst.msk [vmem:[#allocation2 + $0x18] sm:$0xff] %vm16_vm0, %v1120_v20  ;;  %s1121_s0 = smov 64  }
  0x18   :  { %21 = vst.msk [vmem:[#allocation2 + $0x20] sm:$0xff] %vm16_vm0, %v1120_v20  ;;  %22 = vst.msk [vmem:[#allocation2 + $0x28] sm:$0xff] %vm16_vm0, %v1120_v20 }
  0x19   :  { %953 = vmatpush3.bf16.msra.mxu0 %v85_v39  ;;  %1067 = vmatpush3.bf16.msra.mxu1 %v85_v39  ;;  %23 = vst.msk [vmem:[#allocation2 + $0x30] sm:$0xff] %vm16_vm0, %v1120_v20  ;;  %24 = vst.msk [vmem:[#allocation2 + $0x38] sm:$0xff] %vm16_vm0, %v1120_v20 }
  0x1a   :  { %954 = vmatprep.subr.bf16.mxu0 %v92_v42  ;;  %1060 = vmatprep.subr.bf16.mxu1 %v92_v42  ;;  %25 = vst.msk [vmem:[#allocation2 + $0x40] sm:$0xff] %vm16_vm0, %v1120_v20  ;;  %26 = vst.msk [vmem:[#allocation2 + $0x48] sm:$0xff] %vm16_vm0, %v1120_v20 }
  0x1b   :  { %27 = vst.msk [vmem:[#allocation2 + $0x50] sm:$0xff] %vm16_vm0, %v1120_v20  ;;  %28 = vst.msk [vmem:[#allocation2 + $0x58] sm:$0xff] %vm16_vm0, %v1120_v20 }
  0x1c   :  { %29 = vst.msk [vmem:[#allocation2 + $0x60] sm:$0xff] %vm16_vm0, %v1120_v20  ;;  %30 = vst.msk [vmem:[#allocation2 + $0x68] sm:$0xff] %vm16_vm0, %v1120_v20 }
  0x1d   :  { %955 = vmatpush3.bf16.msra.mxu0 %v84_v45  ;;  %1068 = vmatpush3.bf16.msra.mxu1 %v84_v45  ;;  %31 = vst.msk [vmem:[#allocation2 + $0x70] sm:$0xff] %vm16_vm0, %v1120_v20  ;;  %32 = vst.msk [vmem:[#allocation2 + $0x78] sm:$0xff] %vm16_vm0, %v1120_v20  ;;  %v99_v30 = vld [vmem:[#allocation2] sm:$0xff] }
  0x1e   :  { %956 = vmatprep.subr.bf16.mxu0 %v91_v47  ;;  %1061 = vmatprep.subr.bf16.mxu1 %v91_v47  ;;  %33 = vst.msk [vmem:[#allocation2 + $0x80] sm:$0xff] %vm16_vm0, %v1120_v20  ;;  %34 = vst.msk [vmem:[#allocation2 + $0x88] sm:$0xff] %vm16_vm0, %v1120_v20 }
  0x1f   :  { %35 = vst.msk [vmem:[#allocation2 + $0x90] sm:$0xff] %vm16_vm0, %v1120_v20  ;;  %36 = vst.msk [vmem:[#allocation2 + $0x98] sm:$0xff] %vm16_vm0, %v1120_v20 }
  0x20   :  { %37 = vst.msk [vmem:[#allocation2 + $0xa0] sm:$0xff] %vm16_vm0, %v1120_v20  ;;  %38 = vst.msk [vmem:[#allocation2 + $0xa8] sm:$0xff] %vm16_vm0, %v1120_v20 }
  0x21   :  { %957 = vmatpush3.bf16.msra.mxu0 %v83_v49  ;;  %1069 = vmatpush3.bf16.msra.mxu1 %v83_v49  ;;  %39 = vst.msk [vmem:[#allocation2 + $0xb0] sm:$0xff] %vm16_vm0, %v1120_v20  ;;  %40 = vst.msk [vmem:[#allocation2 + $0xb8] sm:$0xff] %vm16_vm0, %v1120_v20 }
  0x22   :  { %41 = vst.msk [vmem:[#allocation2 + $0xc0] sm:$0xff] %vm16_vm0, %v1120_v20  ;;  %42 = vst.msk [vmem:[#allocation2 + $0xc8] sm:$0xff] %vm16_vm0, %v1120_v20 }
  0x23   :  { %43 = vst.msk [vmem:[#allocation2 + $0xd0] sm:$0xff] %vm16_vm0, %v1120_v20  ;;  %44 = vst.msk [vmem:[#allocation2 + $0xd8] sm:$0xff] %vm16_vm0, %v1120_v20 }
  0x24   :  { %356 = vmatmul.mubr.bf16.vlgmr.msra.gmra.mxu0 %v1072_v50  ;;  %420 = vmatmul.mubr.bf16.vlgmr.msra.gmra.mxu1 %v1075_v51  ;;  %45 = vst.msk [vmem:[#allocation2 + $0xe0] sm:$0xff] %vm16_vm0, %v1120_v20  ;;  %46 = vst.msk [vmem:[#allocation2 + $0xe8] sm:$0xff] %vm16_vm0, %v1120_v20  ;;  %v100_v51 = vld [vmem:[#allocation2 + $0x8] sm:$0xff] }
  0x25   :  { %363 = vmatprep.mubr.bf16.mxu0 %v1078_v52  ;;  %427 = vmatprep.mubr.bf16.mxu1 %v1080_v53  ;;  %47 = vst.msk [vmem:[#allocation2 + $0xf0] sm:$0xff] %vm16_vm0, %v1120_v20  ;;  %48 = vst.msk [vmem:[#allocation2 + $0xf8] sm:$0xff] %vm16_vm0, %v1120_v20  ;;  %v115_v33 = vld [vmem:[#allocation2 + $0x80] sm:$0xff]  ;;  %v116_v53 = vld [vmem:[#allocation2 + $0x88] sm:$0xff] }
  0x2c   :  { %364 = vmatmul.mubr.bf16.gmra.mxu0 %v1082_v54  ;;  %428 = vmatmul.mubr.bf16.gmra.mxu1 %v1083_v55 }
  0x2d   :  { %371 = vmatprep.mubr.bf16.mxu0 %v1084_v56  ;;  %435 = vmatprep.mubr.bf16.mxu1 %v1086_v57 }
  0x34   :  { %372 = vmatmul.mubr.bf16.gmra.mxu0 %v1088_v58  ;;  %436 = vmatmul.mubr.bf16.gmra.mxu1 %v1089_v59 }
  0x35   :  { %379 = vmatprep.mubr.bf16.mxu0 %v1090_v60  ;;  %443 = vmatprep.mubr.bf16.mxu1 %v1092_v61  ;;  %v101_v61 = vld [vmem:[#allocation2 + $0x10] sm:$0xff] }
  0x3c   :  { %380 = vmatmul.mubr.bf16.gmra.mxu0 %v1094_v62  ;;  %444 = vmatmul.mubr.bf16.gmra.mxu1 %v1095_v63  ;;  %v117_v63 = vld [vmem:[#allocation2 + $0x90] sm:$0xff] }
  0x3d   :  { %387 = vmatprep.mubr.bf16.mxu0 %v1096_v0  ;;  %451 = vmatprep.mubr.bf16.mxu1 %v1098_v1 }
  0x44   :  { %388 = vmatmul.mubr.bf16.gmra.mxu0 %v1100_v2  ;;  %452 = vmatmul.mubr.bf16.gmra.mxu1 %v1101_v3 }
  0x45   :  { %395 = vmatprep.mubr.bf16.mxu0 %v1102_v4  ;;  %459 = vmatprep.mubr.bf16.mxu1 %v1104_v5 }
  0x4c   :  { %396 = vmatmul.mubr.bf16.gmra.mxu0 %v1106_v6  ;;  %460 = vmatmul.mubr.bf16.gmra.mxu1 %v1107_v7  ;;  %v102_v7 = vld [vmem:[#allocation2 + $0x18] sm:$0xff] }
  0x4d   :  { %403 = vmatprep.mubr.bf16.mxu0 %v1108_v8  ;;  %467 = vmatprep.mubr.bf16.mxu1 %v1110_v9  ;;  %v118_v9 = vld [vmem:[#allocation2 + $0x98] sm:$0xff] }
  0x54   :  { %404 = vmatmul.mubr.bf16.gmra.mxu0 %v1112_v10  ;;  %468 = vmatmul.mubr.bf16.gmra.mxu1 %v1113_v11 }
  0x55   :  { %411 = vmatprep.mubr.bf16.mxu0 %v1114_v12  ;;  %475 = vmatprep.mubr.bf16.mxu1 %v1116_v13 }
  0x5c   :  { %412 = vmatmul.mubr.bf16.gmra.mxu0 %v1118_v14  ;;  %476 = vmatmul.mubr.bf16.gmra.mxu1 %v1119_v19 }
  0xe4   :  { %v958_v27 = vpop.f32.mrf.mxu0  ;;  %v1006_v28 = vpop.f32.mrf.mxu1 }
  0xe6   :  { %v959_v31 = vpop.f32.mrf.mxu0  ;;  %v1007_v35 = vpop.f32.mrf.mxu1 }
  0xe7   :  { %v960_v39 = vadd.f32 %v959_v31, %v958_v27  ;;  %v1008_v42 = vadd.f32 %v1007_v35, %v1006_v28 }
  0xe8   :  { %v961_v45 = vpop.f32.mrf.mxu0  ;;  %v1009_v47 = vpop.f32.mrf.mxu1 }
  0xe9   :  { %v484_v49 = vadd.f32 %v960_v39, %v99_v30  ;;  %v500_v50 = vadd.f32 %v1008_v42, %v115_v33  ;;  %v103_v33 = vld [vmem:[#allocation2 + $0x20] sm:$0xff] }
  0xea   :  { %v962_v52 = vpop.f32.mrf.mxu0  ;;  %v1010_v54 = vpop.f32.mrf.mxu1  ;;  %v119_v42 = vld [vmem:[#allocation2 + $0xa0] sm:$0xff] }
  0xeb   :  { %517 = vst.msk [vmem:[#allocation2] sm:$0xff] %vm16_vm0, %v484_v49  ;;  %533 = vst.msk [vmem:[#allocation2 + $0x80] sm:$0xff] %vm16_vm0, %v500_v50  ;;  %v963_v55 = vadd.f32 %v962_v52, %v961_v45  ;;  %v1011_v56 = vadd.f32 %v1010_v54, %v1009_v47 }
  0xec   :  { %v964_v57 = vpop.f32.mrf.mxu0  ;;  %v1012_v58 = vpop.f32.mrf.mxu1 }
  0xed   :  { %v485_v59 = vadd.f32 %v963_v55, %v100_v51  ;;  %v501_v60 = vadd.f32 %v1011_v56, %v116_v53 }
  0xee   :  { %v965_v62 = vpop.f32.mrf.mxu0  ;;  %v1013_v0 = vpop.f32.mrf.mxu1 }
  0xef   :  { %518 = vst.msk [vmem:[#allocation2 + $0x8] sm:$0xff] %vm16_vm0, %v485_v59  ;;  %534 = vst.msk [vmem:[#allocation2 + $0x88] sm:$0xff] %vm16_vm0, %v501_v60  ;;  %v966_v1 = vadd.f32 %v965_v62, %v964_v57  ;;  %v1014_v2 = vadd.f32 %v1013_v0, %v1012_v58 }
  0xf0   :  { %v967_v3 = vpop.f32.mrf.mxu0  ;;  %v1015_v4 = vpop.f32.mrf.mxu1 }
  0xf1   :  { %v486_v5 = vadd.f32 %v966_v1, %v101_v61  ;;  %v502_v6 = vadd.f32 %v1014_v2, %v117_v63  ;;  %v120_v61 = vld [vmem:[#allocation2 + $0xa8] sm:$0xff] }
  0xf2   :  { %v968_v8 = vpop.f32.mrf.mxu0  ;;  %v1016_v10 = vpop.f32.mrf.mxu1  ;;  %v1431_v11 = vld [vmem:[#allocation2] sm:$0xff] }
  0xf3   :  { %v1433_v12 = vld [vmem:[#allocation2 + $0x80] sm:$0xff]  ;;  %519 = vst.msk [vmem:[#allocation2 + $0x10] sm:$0xff] %vm16_vm0, %v486_v5  ;;  %535 = vst.msk [vmem:[#allocation2 + $0x90] sm:$0xff] %vm16_vm0, %v502_v6  ;;  %v969_v13 = vadd.f32 %v968_v8, %v967_v3  ;;  %v1017_v14 = vadd.f32 %v1016_v10, %v1015_v4  ;;  %v618_v19 = vmul.f32 3.0, %v1431_v11 }
  0xf4   :  { %v634_v20 = vmul.f32 3.0, %v1433_v12  ;;  %v970_v27 = vpop.f32.mrf.mxu0  ;;  %v1018_v28 = vpop.f32.mrf.mxu1 }
  0xf5   :  { %v487_v30 = vadd.f32 %v969_v13, %v102_v7  ;;  %v503_v31 = vadd.f32 %v1017_v14, %v118_v9  ;;  %v650_v35 = vadd.f32 %v618_v19, %v1294_v46  ;;  %v121_v19 = vld [vmem:[#allocation2 + $0xb0] sm:$0xff] }
  0xf6   :  { %v971_v39 = vpop.f32.mrf.mxu0  ;;  %v1019_v45 = vpop.f32.mrf.mxu1  ;;  %v1440_v47 = vld [vmem:[#allocation2 + $0x88] sm:$0xff]  ;;  %v666_v49 = vadd.f32 %v634_v20, %v1282_v43 }
  0xf7   :  { %v1443_v50 = vld [vmem:[#allocation2 + $0x8] sm:$0xff]  ;;  %520 = vst.msk [vmem:[#allocation2 + $0x18] sm:$0xff] %vm16_vm0, %v487_v30  ;;  %536 = vst.msk [vmem:[#allocation2 + $0x98] sm:$0xff] %vm16_vm0, %v503_v31  ;;  %v972_v51 = vadd.f32 %v971_v39, %v970_v27  ;;  %v1020_v52 = vadd.f32 %v1019_v45, %v1018_v28  ;;  %v682_v53 = vmul.f32 0.25, %v650_v35  ;;  %v635_v54 = vmul.f32 3.0, %v1440_v47 }
  0xf8   :  { %v973_v55 = vpop.f32.mrf.mxu0  ;;  %v1021_v46 = vpop.f32.mrf.mxu1  ;;  %v619_v56 = vmul.f32 3.0, %v1443_v50  ;;  %v104_v43 = vld [vmem:[#allocation2 + $0x28] sm:$0xff]  ;;  %v698_v63 = vmul.f32 0.25, %v666_v49 }
  0xf9   :  { %v488_v57 = vadd.f32 %v972_v51, %v103_v33  ;;  %v504_v58 = vadd.f32 %v1020_v52, %v119_v42  ;;  %746 = vrot.lane.b32.xlu0 %v682_v53, %s1121_s0  ;;  %v667_v59 = vadd.f32 %v635_v54, %v1287_v44 }
  0xfa   :  { %v974_v60 = vpop.f32.mrf.mxu0  ;;  %v1022_v62 = vpop.f32.mrf.mxu1  ;;  %v1451_v0 = vld [vmem:[#allocation2 + $0x10] sm:$0xff]  ;;  %v651_v1 = vadd.f32 %v619_v56, %v1301_v48 }
  0xfb   :  { %v1454_v2 = vld [vmem:[#allocation2 + $0x90] sm:$0xff]  ;;  %521 = vst.msk [vmem:[#allocation2 + $0x20] sm:$0xff] %vm16_vm0, %v488_v57  ;;  %537 = vst.msk [vmem:[#allocation2 + $0xa0] sm:$0xff] %vm16_vm0, %v504_v58  ;;  %v975_v3 = vadd.f32 %v974_v60, %v973_v55  ;;  %v1023_v4 = vadd.f32 %v1022_v62, %v1021_v46  ;;  %v699_v5 = vmul.f32 0.25, %v667_v59  ;;  %v620_v6 = vmul.f32 3.0, %v1451_v0  ;;  %v122_v55 = vld [vmem:[#allocation2 + $0xb8] sm:$0xff] }
  0xfc   :  { %v976_v44 = vpop.f32.mrf.mxu0  ;;  %v1024_v7 = vpop.f32.mrf.mxu1  ;;  %v636_v8 = vmul.f32 3.0, %v1454_v2  ;;  %v105_v48 = vld [vmem:[#allocation2 + $0x30] sm:$0xff]  ;;  %v683_v27 = vmul.f32 0.25, %v651_v1 }
  0xfd   :  { %v489_v9 = vadd.f32 %v975_v3, %v104_v43  ;;  %v505_v10 = vadd.f32 %v1023_v4, %v120_v61  ;;  %780 = vrot.lane.b32.xlu1 %v699_v5, %s1121_s0  ;;  %778 = vrot.lane.b32.xlu0 %v698_v63, %s1121_s0  ;;  %v652_v13 = vadd.f32 %v620_v6, %v1270_v40 }
  0xfe   :  { %v977_v14 = vpop.f32.mrf.mxu0  ;;  %v1025_v20 = vpop.f32.mrf.mxu1  ;;  %v1463_v28 = vld [vmem:[#allocation2 + $0x18] sm:$0xff]  ;;  %v668_v30 = vadd.f32 %v636_v8, %v1258_v37 }
  0xff   :  { %v1466_v31 = vld [vmem:[#allocation2 + $0x98] sm:$0xff]  ;;  %522 = vst.msk [vmem:[#allocation2 + $0x28] sm:$0xff] %vm16_vm0, %v489_v9  ;;  %538 = vst.msk [vmem:[#allocation2 + $0xa8] sm:$0xff] %vm16_vm0, %v505_v10  ;;  %v978_v33 = vadd.f32 %v977_v14, %v976_v44  ;;  %v1026_v35 = vadd.f32 %v1025_v20, %v1024_v7  ;;  %v684_v39 = vmul.f32 0.25, %v652_v13  ;;  %v621_v42 = vmul.f32 3.0, %v1463_v28  ;;  %v123_v44 = vld [vmem:[#allocation2 + $0xc0] sm:$0xff] }
 0x100   :  { %v979_v40 = vpop.f32.mrf.mxu0  ;;  %v1027_v45 = vpop.f32.mrf.mxu1  ;;  %v637_v49 = vmul.f32 3.0, %v1466_v31  ;;  %v106_v37 = vld [vmem:[#allocation2 + $0x38] sm:$0xff]  ;;  %v700_v56 = vmul.f32 0.25, %v668_v30 }
 0x101   :  { %v490_v51 = vadd.f32 %v978_v33, %v105_v48  ;;  %v506_v52 = vadd.f32 %v1026_v35, %v121_v19  ;;  %750 = vrot.lane.b32.xlu1 %v684_v39, %s1121_s0  ;;  %748 = vrot.lane.b32.xlu0 %v683_v27, %s1121_s0  ;;  %v653_v53 = vadd.f32 %v621_v42, %v1275_v41 }
 0x102   :  { %v980_v54 = vpop.f32.mrf.mxu0  ;;  %v1028_v46 = vpop.f32.mrf.mxu1  ;;  %v669_v57 = vadd.f32 %v637_v49, %v1263_v38  ;;  %v1476_v58 = vld [vmem:[#allocation2 + $0x20] sm:$0xff] }
 0x103   :  { %v1478_v43 = vld [vmem:[#allocation2 + $0xa0] sm:$0xff]  ;;  %523 = vst.msk [vmem:[#allocation2 + $0x30] sm:$0xff] %vm16_vm0, %v490_v51  ;;  %539 = vst.msk [vmem:[#allocation2 + $0xb0] sm:$0xff] %vm16_vm0, %v506_v52  ;;  %v981_v59 = vadd.f32 %v980_v54, %v979_v40  ;;  %v1029_v60 = vadd.f32 %v1028_v46, %v1027_v45  ;;  %v685_v61 = vmul.f32 0.25, %v653_v53  ;;  %v622_v62 = vmul.f32 3.0, %v1476_v58  ;;  %v124_v40 = vld [vmem:[#allocation2 + $0xc8] sm:$0xff] }
 0x104   :  { %v982_v41 = vpop.f32.mrf.mxu0  ;;  %v1030_v63 = vpop.f32.mrf.mxu1  ;;  %v638_v1 = vmul.f32 3.0, %v1478_v43  ;;  %v107_v38 = vld [vmem:[#allocation2 + $0x40] sm:$0xff]  ;;  %v701_v8 = vmul.f32 0.25, %v669_v57 }
 0x105   :  { %v491_v3 = vadd.f32 %v981_v59, %v106_v37  ;;  %v507_v4 = vadd.f32 %v1029_v60, %v122_v55  ;;  %752 = vrot.lane.b32.xlu1 %v685_v61, %s1121_s0  ;;  %782 = vrot.lane.b32.xlu0 %v700_v56, %s1121_s0  ;;  %v654_v5 = vadd.f32 %v622_v62, %v1246_v34 }
 0x106   :  { %v983_v6 = vpop.f32.mrf.mxu0  ;;  %v1031_v7 = vpop.f32.mrf.mxu1  ;;  %v1487_v9 = vld [vmem:[#allocation2 + $0x28] sm:$0xff]  ;;  %v670_v10 = vadd.f32 %v638_v1, %v1229_v29 }
 0x107   :  { %v1490_v48 = vld [vmem:[#allocation2 + $0xa8] sm:$0xff]  ;;  %524 = vst.msk [vmem:[#allocation2 + $0x38] sm:$0xff] %vm16_vm0, %v491_v3  ;;  %540 = vst.msk [vmem:[#allocation2 + $0xb8] sm:$0xff] %vm16_vm0, %v507_v4  ;;  %v984_v13 = vadd.f32 %v983_v6, %v982_v41  ;;  %v1032_v14 = vadd.f32 %v1031_v7, %v1030_v63  ;;  %v686_v19 = vmul.f32 0.25, %v654_v5  ;;  %v623_v20 = vmul.f32 3.0, %v1487_v9  ;;  %v125_v41 = vld [vmem:[#allocation2 + $0xd0] sm:$0xff] }
 0x108   :  { %v985_v34 = vpop.f32.mrf.mxu0  ;;  %v1033_v27 = vpop.f32.mrf.mxu1  ;;  %v639_v30 = vmul.f32 3.0, %v1490_v48  ;;  %v108_v29 = vld [vmem:[#allocation2 + $0x48] sm:$0xff]  ;;  %v702_v49 = vmul.f32 0.25, %v670_v10 }
 0x109   :  { %v492_v33 = vadd.f32 %v984_v13, %v107_v38  ;;  %v508_v35 = vadd.f32 %v1032_v14, %v123_v44  ;;  %784 = vrot.lane.b32.xlu1 %v701_v8, %s1121_s0  ;;  %754 = vrot.lane.b32.xlu0 %v686_v19, %s1121_s0  ;;  %v655_v39 = vadd.f32 %v623_v20, %v1253_v36 }
 0x10a   :  { %v986_v42 = vpop.f32.mrf.mxu0  ;;  %v1034_v45 = vpop.f32.mrf.mxu1  ;;  %v671_v51 = vadd.f32 %v639_v30, %v1239_v32  ;;  %v1500_v52 = vld [vmem:[#allocation2 + $0x30] sm:$0xff] }
 0x10b   :  { %v1502_v37 = vld [vmem:[#allocation2 + $0xb0] sm:$0xff]  ;;  %525 = vst.msk [vmem:[#allocation2 + $0x40] sm:$0xff] %vm16_vm0, %v492_v33  ;;  %541 = vst.msk [vmem:[#allocation2 + $0xc0] sm:$0xff] %vm16_vm0, %v508_v35  ;;  %v987_v53 = vadd.f32 %v986_v42, %v985_v34  ;;  %v1035_v54 = vadd.f32 %v1034_v45, %v1033_v27  ;;  %v687_v55 = vmul.f32 0.25, %v655_v39  ;;  %v624_v46 = vmul.f32 3.0, %v1500_v52  ;;  %v126_v34 = vld [vmem:[#allocation2 + $0xd8] sm:$0xff] }
 0x10c   :  { %v988_v36 = vpop.f32.mrf.mxu0  ;;  %v1036_v56 = vpop.f32.mrf.mxu1  ;;  %v640_v57 = vmul.f32 3.0, %v1502_v37  ;;  %v109_v32 = vld [vmem:[#allocation2 + $0x50] sm:$0xff]  ;;  %v703_v1 = vmul.f32 0.25, %v671_v51 }
 0x10d   :  { %v493_v59 = vadd.f32 %v987_v53, %v108_v29  ;;  %v509_v60 = vadd.f32 %v1035_v54, %v124_v40  ;;  %756 = vrot.lane.b32.xlu1 %v687_v55, %s1121_s0  ;;  %786 = vrot.lane.b32.xlu0 %v702_v49, %s1121_s0  ;;  %v656_v61 = vadd.f32 %v624_v46, %v1214_v25 }
 0x10e   :  { %v989_v62 = vpop.f32.mrf.mxu0  ;;  %v1037_v63 = vpop.f32.mrf.mxu1  ;;  %v1511_v3 = vld [vmem:[#allocation2 + $0x38] sm:$0xff]  ;;  %v672_v4 = vadd.f32 %v640_v57, %v1204_v23 }
 0x10f   :  { %v1514_v38 = vld [vmem:[#allocation2 + $0xb8] sm:$0xff]  ;;  %526 = vst.msk [vmem:[#allocation2 + $0x48] sm:$0xff] %vm16_vm0, %v493_v59  ;;  %542 = vst.msk [vmem:[#allocation2 + $0xc8] sm:$0xff] %vm16_vm0, %v509_v60  ;;  %v990_v5 = vadd.f32 %v989_v62, %v988_v36  ;;  %v1038_v6 = vadd.f32 %v1037_v63, %v1036_v56  ;;  %v688_v44 = vmul.f32 0.25, %v656_v61  ;;  %v625_v7 = vmul.f32 3.0, %v1511_v3  ;;  %v127_v36 = vld [vmem:[#allocation2 + $0xe0] sm:$0xff] }
 0x110   :  { %v991_v25 = vpop.f32.mrf.mxu0  ;;  %v1039_v8 = vpop.f32.mrf.mxu1  ;;  %v641_v10 = vmul.f32 3.0, %v1514_v38  ;;  %v110_v23 = vld [vmem:[#allocation2 + $0x58] sm:$0xff]  ;;  %v704_v30 = vmul.f32 0.25, %v672_v4 }
 0x111   :  { %v494_v13 = vadd.f32 %v990_v5, %v109_v32  ;;  %v510_v14 = vadd.f32 %v1038_v6, %v125_v41  ;;  %788 = vrot.lane.b32.xlu1 %v703_v1, %s1121_s0  ;;  %758 = vrot.lane.b32.xlu0 %v688_v44, %s1121_s0  ;;  %v657_v19 = vadd.f32 %v625_v7, %v1219_v26 }
 0x112   :  { %v992_v20 = vpop.f32.mrf.mxu0  ;;  %v1040_v27 = vpop.f32.mrf.mxu1  ;;  %v673_v33 = vadd.f32 %v641_v10, %v1209_v24  ;;  %v1524_v35 = vld [vmem:[#allocation2 + $0x40] sm:$0xff] }
 0x113   :  { %v1526_v29 = vld [vmem:[#allocation2 + $0xc0] sm:$0xff]  ;;  %527 = vst.msk [vmem:[#allocation2 + $0x50] sm:$0xff] %vm16_vm0, %v494_v13  ;;  %543 = vst.msk [vmem:[#allocation2 + $0xd0] sm:$0xff] %vm16_vm0, %v510_v14  ;;  %v993_v39 = vadd.f32 %v992_v20, %v991_v25  ;;  %v1041_v42 = vadd.f32 %v1040_v27, %v1039_v8  ;;  %v689_v40 = vmul.f32 0.25, %v657_v19  ;;  %v626_v45 = vmul.f32 3.0, %v1524_v35  ;;  %v128_v25 = vld [vmem:[#allocation2 + $0xe8] sm:$0xff] }
 0x114   :  { %v994_v26 = vpop.f32.mrf.mxu0  ;;  %v1042_v49 = vpop.f32.mrf.mxu1  ;;  %v642_v51 = vmul.f32 3.0, %v1526_v29  ;;  %v111_v24 = vld [vmem:[#allocation2 + $0x60] sm:$0xff]  ;;  %v705_v57 = vmul.f32 0.25, %v673_v33 }
 0x115   :  { %v495_v53 = vadd.f32 %v993_v39, %v110_v23  ;;  %v511_v54 = vadd.f32 %v1041_v42, %v126_v34  ;;  %760 = vrot.lane.b32.xlu1 %v689_v40, %s1121_s0  ;;  %790 = vrot.lane.b32.xlu0 %v704_v30, %s1121_s0  ;;  %v658_v55 = vadd.f32 %v626_v45, %v1194_v21  ;;  %v113_v40 = vld [vmem:[#allocation2 + $0x70] sm:$0xff] }
 0x116   :  { %v995_v46 = vpop.f32.mrf.mxu0  ;;  %v1043_v56 = vpop.f32.mrf.mxu1  ;;  %v1535_v59 = vld [vmem:[#allocation2 + $0x48] sm:$0xff]  ;;  %v674_v60 = vadd.f32 %v642_v51, %v1180_v17 }
 0x117   :  { %v1538_v32 = vld [vmem:[#allocation2 + $0xc8] sm:$0xff]  ;;  %528 = vst.msk [vmem:[#allocation2 + $0x58] sm:$0xff] %vm16_vm0, %v495_v53  ;;  %544 = vst.msk [vmem:[#allocation2 + $0xd8] sm:$0xff] %vm16_vm0, %v511_v54  ;;  %v996_v61 = vadd.f32 %v995_v46, %v994_v26  ;;  %v1044_v62 = vadd.f32 %v1043_v56, %v1042_v49  ;;  %v690_v41 = vmul.f32 0.25, %v658_v55  ;;  %v627_v63 = vmul.f32 3.0, %v1535_v59  ;;  %v129_v49 = vld [vmem:[#allocation2 + $0xf0] sm:$0xff] }
 0x118   :  { %v997_v21 = vpop.f32.mrf.mxu0  ;;  %v1045_v1 = vpop.f32.mrf.mxu1  ;;  %v643_v4 = vmul.f32 3.0, %v1538_v32  ;;  %v112_v17 = vld [vmem:[#allocation2 + $0x68] sm:$0xff]  ;;  %v706_v10 = vmul.f32 0.25, %v674_v60 }
 0x119   :  { %v496_v5 = vadd.f32 %v996_v61, %v111_v24  ;;  %v512_v6 = vadd.f32 %v1044_v62, %v127_v36  ;;  %792 = vrot.lane.b32.xlu1 %v705_v57, %s1121_s0  ;;  %762 = vrot.lane.b32.xlu0 %v690_v41, %s1121_s0  ;;  %v659_v44 = vadd.f32 %v627_v63, %v1199_v22  ;;  %v580_v22 = vld [vmem:[%s1799_s1 + $0xd0] sm:$0xff] }
 0x11a   :  { %v998_v7 = vpop.f32.mrf.mxu0  ;;  %v1046_v8 = vpop.f32.mrf.mxu1  ;;  %v675_v13 = vadd.f32 %v643_v4, %v1185_v18  ;;  %v1548_v14 = vld [vmem:[#allocation2 + $0x50] sm:$0xff] }
 0x11b   :  { %v1550_v23 = vld [vmem:[#allocation2 + $0xd0] sm:$0xff]  ;;  %529 = vst.msk [vmem:[#allocation2 + $0x60] sm:$0xff] %vm16_vm0, %v496_v5  ;;  %545 = vst.msk [vmem:[#allocation2 + $0xe0] sm:$0xff] %vm16_vm0, %v512_v6  ;;  %v999_v19 = vadd.f32 %v998_v7, %v997_v21  ;;  %v1047_v20 = vadd.f32 %v1046_v8, %v1045_v1  ;;  %v691_v34 = vmul.f32 0.25, %v659_v44  ;;  %v628_v27 = vmul.f32 3.0, %v1548_v14  ;;  %v114_v21 = vld [vmem:[#allocation2 + $0x78] sm:$0xff] }
 0x11c   :  { %v1000_v30 = vpop.f32.mrf.mxu0  ;;  %v1048_v33 = vpop.f32.mrf.mxu1  ;;  %v644_v18 = vmul.f32 3.0, %v1550_v23  ;;  %v707_v53 = vmul.f32 0.25, %v675_v13  ;;  %v130_v1 = vld [vmem:[#allocation2 + $0xf8] sm:$0xff]  ;;  %v566_v7 = vld [vmem:[%s1799_s1 + $0x60] sm:$0xff] }
 0x11d   :  { %v497_v39 = vadd.f32 %v999_v19, %v112_v17  ;;  %v513_v42 = vadd.f32 %v1047_v20, %v128_v25  ;;  %764 = vrot.lane.b32.xlu1 %v691_v34, %s1121_s0  ;;  %794 = vrot.lane.b32.xlu0 %v706_v10, %s1121_s0  ;;  %v660_v45 = vadd.f32 %v628_v27, %v1170_v15  ;;  %v581_v15 = vld [vmem:[%s1799_s1 + $0xd8] sm:$0xff]  ;;  %v582_v20 = vld [vmem:[%s1799_s1 + $0xe0] sm:$0xff] }
 0x11e   :  { %v1001_v26 = vpop.f32.mrf.mxu0  ;;  %v1049_v51 = vpop.f32.mrf.mxu1  ;;  %v1562_v54 = vld [vmem:[#allocation2 + $0x58] sm:$0xff]  ;;  %v676_v24 = vadd.f32 %v644_v18, %v580_v22  ;;  %v567_v18 = vld [vmem:[%s1799_s1 + $0x68] sm:$0xff] }
 0x11f   :  { %v1564_v55 = vld [vmem:[#allocation2 + $0xd8] sm:$0xff]  ;;  %530 = vst.msk [vmem:[#allocation2 + $0x68] sm:$0xff] %vm16_vm0, %v497_v39  ;;  %546 = vst.msk [vmem:[#allocation2 + $0xe8] sm:$0xff] %vm16_vm0, %v513_v42  ;;  %v1002_v46 = vadd.f32 %v1001_v26, %v1000_v30  ;;  %v1050_v36 = vadd.f32 %v1049_v51, %v1048_v33  ;;  %v692_v56 = vmul.f32 0.25, %v660_v45  ;;  %v629_v57 = vmul.f32 3.0, %v1562_v54 }
 0x120   :  { %v1003_v60 = vpop.f32.mrf.mxu0  ;;  %v1051_v61 = vpop.f32.mrf.mxu1  ;;  %v645_v62 = vmul.f32 3.0, %v1564_v55  ;;  %v708_v17 = vmul.f32 0.25, %v676_v24 }
 0x121   :  { %v498_v41 = vadd.f32 %v1002_v46, %v113_v40  ;;  %v514_v63 = vadd.f32 %v1050_v36, %v129_v49  ;;  %796 = vrot.lane.b32.xlu1 %v707_v53, %s1121_s0  ;;  %766 = vrot.lane.b32.xlu0 %v692_v56, %s1121_s0  ;;  %v661_v4 = vadd.f32 %v629_v57, %v1175_v16  ;;  %v583_v49 = vld [vmem:[%s1799_s1 + $0xe8] sm:$0xff]  ;;  %v568_v46 = vld [vmem:[%s1799_s1 + $0x70] sm:$0xff] }
 0x122   :  { %v1004_v5 = vpop.f32.mrf.mxu0  ;;  %v1052_v6 = vpop.f32.mrf.mxu1  ;;  %v677_v44 = vadd.f32 %v645_v62, %v581_v15  ;;  %v1579_v25 = vld [vmem:[#allocation2 + $0x60] sm:$0xff]  ;;  %v584_v62 = vld [vmem:[%s1799_s1 + $0xf0] sm:$0xff] }
 0x123   :  { %v1581_v8 = vld [vmem:[#allocation2 + $0xe0] sm:$0xff]  ;;  %531 = vst.msk [vmem:[#allocation2 + $0x70] sm:$0xff] %vm16_vm0, %v498_v41  ;;  %547 = vst.msk [vmem:[#allocation2 + $0xf0] sm:$0xff] %vm16_vm0, %v514_v63  ;;  %v1005_v10 = vadd.f32 %v1004_v5, %v1003_v60  ;;  %v1053_v13 = vadd.f32 %v1052_v6, %v1051_v61  ;;  %v693_v19 = vmul.f32 0.25, %v661_v4  ;;  %v630_v16 = vmul.f32 3.0, %v1579_v25 }
 0x124   :  { %v646_v34 = vmul.f32 3.0, %v1581_v8  ;;  %v709_v33 = vmul.f32 0.25, %v677_v44 }
 0x125   :  { %v499_v27 = vadd.f32 %v1005_v10, %v114_v21  ;;  %v515_v22 = vadd.f32 %v1053_v13, %v130_v1  ;;  %768 = vrot.lane.b32.xlu1 %v693_v19, %s1121_s0  ;;  %798 = vrot.lane.b32.xlu0 %v708_v17, %s1121_s0  ;;  %v662_v30 = vadd.f32 %v630_v16, %v566_v7  ;;  %v569_v21 = vld [vmem:[%s1799_s1 + $0x78] sm:$0xff] }
 0x126   :  { %v1595_v39 = vld [vmem:[#allocation2 + $0x68] sm:$0xff]  ;;  %v678_v26 = vadd.f32 %v646_v34, %v582_v20  ;;  %v585_v7 = vld [vmem:[%s1799_s1 + $0xf8] sm:$0xff] }
 0x127   :  { %v1597_v42 = vld [vmem:[#allocation2 + $0xe8] sm:$0xff]  ;;  %532 = vst.msk [vmem:[#allocation2 + $0x78] sm:$0xff] %vm16_vm0, %v499_v27  ;;  %548 = vst.msk [vmem:[#allocation2 + $0xf8] sm:$0xff] %vm16_vm0, %v515_v22  ;;  %v694_v40 = vmul.f32 0.25, %v662_v30  ;;  %v631_v45 = vmul.f32 3.0, %v1595_v39 }
 0x128   :  { %v647_v51 = vmul.f32 3.0, %v1597_v42  ;;  %v710_v15 = vmul.f32 0.25, %v678_v26 }
 0x129   :  { %800 = vrot.lane.b32.xlu1 %v709_v33, %s1121_s0  ;;  %770 = vrot.lane.b32.xlu0 %v694_v40, %s1121_s0  ;;  %v663_v53 = vadd.f32 %v631_v45, %v567_v18 }
 0x12a   :  { %v679_v24 = vadd.f32 %v647_v51, %v583_v49  ;;  %v1611_v36 = vld [vmem:[#allocation2 + $0x70] sm:$0xff] }
 0x12b   :  { %v1613_v56 = vld [vmem:[#allocation2 + $0xf0] sm:$0xff]  ;;  %v695_v57 = vmul.f32 0.25, %v663_v53  ;;  %v632_v60 = vmul.f32 3.0, %v1611_v36 }
 0x12c   :  { %v648_v61 = vmul.f32 3.0, %v1613_v56  ;;  %v711_v63 = vmul.f32 0.25, %v679_v24 }
 0x12d   :  { %772 = vrot.lane.b32.xlu1 %v695_v57, %s1121_s0  ;;  %802 = vrot.lane.b32.xlu0 %v710_v15, %s1121_s0  ;;  %v664_v41 = vadd.f32 %v632_v60, %v568_v46 }
 0x12e   :  { %v1625_v1 = vld [vmem:[#allocation2 + $0x78] sm:$0xff]  ;;  %v680_v17 = vadd.f32 %v648_v61, %v584_v62 }
 0x12f   :  { %v1627_v4 = vld [vmem:[#allocation2 + $0xf8] sm:$0xff]  ;;  %v696_v5 = vmul.f32 0.25, %v664_v41  ;;  %v633_v6 = vmul.f32 3.0, %v1625_v1 }
 0x130   :  { %v649_v44 = vmul.f32 3.0, %v1627_v4  ;;  %v712_v19 = vmul.f32 0.25, %v680_v17 }
 0x131   :  { %804 = vrot.lane.b32.xlu1 %v711_v63, %s1121_s0  ;;  %774 = vrot.lane.b32.xlu0 %v696_v5, %s1121_s0  ;;  %v665_v10 = vadd.f32 %v633_v6, %v569_v21 }
 0x132   :  { %v681_v16 = vadd.f32 %v649_v44, %v585_v7 }
 0x133   :  { %v697_v13 = vmul.f32 0.25, %v665_v10 }
 0x134   :  { %v713_v20 = vmul.f32 0.25, %v681_v16 }
 0x135   :  { %776 = vrot.lane.b32.xlu1 %v697_v13, %s1121_s0  ;;  %806 = vrot.lane.b32.xlu0 %v712_v19, %s1121_s0 }
 0x139   :  { %808 = vrot.lane.b32.xlu1 %v713_v20, %s1121_s0 }
 0x16b   :  { %v747_v34 = vpop.permute.xlu0 %746 }
 0x16c   :  { %v842_v27 = vsel %vm16_vm0, %v1431_v11, %v747_v34 }
 0x16d   :  { %874 = vst [vmem:[%s1801_s2] sm:$0xff] %v842_v27 }
 0x16f   :  { %v781_v22 = vpop.permute.xlu1 %780  ;;  %v779_v30 = vpop.permute.xlu0 %778 }
 0x170   :  { %v859_v33 = vsel %vm16_vm0, %v1440_v47, %v781_v22  ;;  %v858_v18 = vsel %vm16_vm0, %v1433_v12, %v779_v30 }
 0x171   :  { %891 = vst [vmem:[%s1801_s2 + $0x88] sm:$0xff] %v859_v33  ;;  %890 = vst [vmem:[%s1801_s2 + $0x80] sm:$0xff] %v858_v18 }
 0x173   :  { %v751_v11 = vpop.permute.xlu1 %750  ;;  %v749_v40 = vpop.permute.xlu0 %748 }
 0x174   :  { %v844_v45 = vsel %vm16_vm0, %v1451_v0, %v751_v11  ;;  %v843_v26 = vsel %vm16_vm0, %v1443_v50, %v749_v40 }
 0x175   :  { %876 = vst [vmem:[%s1801_s2 + $0x10] sm:$0xff] %v844_v45  ;;  %875 = vst [vmem:[%s1801_s2 + $0x8] sm:$0xff] %v843_v26 }
 0x177   :  { %v753_v12 = vpop.permute.xlu1 %752  ;;  %v783_v47 = vpop.permute.xlu0 %782 }
 0x178   :  { %v845_v49 = vsel %vm16_vm0, %v1463_v28, %v753_v12  ;;  %v860_v51 = vsel %vm16_vm0, %v1454_v2, %v783_v47 }
 0x179   :  { %877 = vst [vmem:[%s1801_s2 + $0x18] sm:$0xff] %v845_v49  ;;  %892 = vst [vmem:[%s1801_s2 + $0x90] sm:$0xff] %v860_v51 }
 0x17b   :  { %v785_v50 = vpop.permute.xlu1 %784  ;;  %v755_v0 = vpop.permute.xlu0 %754 }
 0x17c   :  { %v861_v53 = vsel %vm16_vm0, %v1466_v31, %v785_v50  ;;  %v846_v24 = vsel %vm16_vm0, %v1476_v58, %v755_v0 }
 0x17d   :  { %893 = vst [vmem:[%s1801_s2 + $0x98] sm:$0xff] %v861_v53  ;;  %878 = vst [vmem:[%s1801_s2 + $0x20] sm:$0xff] %v846_v24 }
 0x17f   :  { %v757_v2 = vpop.permute.xlu1 %756  ;;  %v787_v28 = vpop.permute.xlu0 %786 }
 0x180   :  { %v847_v46 = vsel %vm16_vm0, %v1487_v9, %v757_v2  ;;  %v862_v57 = vsel %vm16_vm0, %v1478_v43, %v787_v28 }
 0x181   :  { %879 = vst [vmem:[%s1801_s2 + $0x28] sm:$0xff] %v847_v46  ;;  %894 = vst [vmem:[%s1801_s2 + $0xa0] sm:$0xff] %v862_v57 }
 0x183   :  { %v789_v31 = vpop.permute.xlu1 %788  ;;  %v759_v58 = vpop.permute.xlu0 %758 }
 0x184   :  { %v863_v15 = vsel %vm16_vm0, %v1490_v48, %v789_v31  ;;  %v848_v60 = vsel %vm16_vm0, %v1500_v52, %v759_v58 }
 0x185   :  { %895 = vst [vmem:[%s1801_s2 + $0xa8] sm:$0xff] %v863_v15  ;;  %880 = vst [vmem:[%s1801_s2 + $0x30] sm:$0xff] %v848_v60 }
 0x187   :  { %v761_v43 = vpop.permute.xlu1 %760  ;;  %v791_v9 = vpop.permute.xlu0 %790 }
 0x188   :  { %v849_v61 = vsel %vm16_vm0, %v1511_v3, %v761_v43  ;;  %v864_v62 = vsel %vm16_vm0, %v1502_v37, %v791_v9 }
 0x189   :  { %881 = vst [vmem:[%s1801_s2 + $0x38] sm:$0xff] %v849_v61  ;;  %896 = vst [vmem:[%s1801_s2 + $0xb0] sm:$0xff] %v864_v62 }
 0x18b   :  { %v793_v48 = vpop.permute.xlu1 %792  ;;  %v763_v52 = vpop.permute.xlu0 %762 }
 0x18c   :  { %v865_v41 = vsel %vm16_vm0, %v1514_v38, %v793_v48  ;;  %v850_v63 = vsel %vm16_vm0, %v1524_v35, %v763_v52 }
 0x18d   :  { %897 = vst [vmem:[%s1801_s2 + $0xb8] sm:$0xff] %v865_v41  ;;  %882 = vst [vmem:[%s1801_s2 + $0x40] sm:$0xff] %v850_v63 }
 0x18f   :  { %v765_v37 = vpop.permute.xlu1 %764  ;;  %v795_v3 = vpop.permute.xlu0 %794 }
 0x190   :  { %v851_v21 = vsel %vm16_vm0, %v1535_v59, %v765_v37  ;;  %v866_v5 = vsel %vm16_vm0, %v1526_v29, %v795_v3 }
 0x191   :  { %883 = vst [vmem:[%s1801_s2 + $0x48] sm:$0xff] %v851_v21  ;;  %898 = vst [vmem:[%s1801_s2 + $0xc0] sm:$0xff] %v866_v5 }
 0x193   :  { %v797_v38 = vpop.permute.xlu1 %796  ;;  %v767_v35 = vpop.permute.xlu0 %766 }
 0x194   :  { %v867_v6 = vsel %vm16_vm0, %v1538_v32, %v797_v38  ;;  %v852_v17 = vsel %vm16_vm0, %v1548_v14, %v767_v35 }
 0x195   :  { %899 = vst [vmem:[%s1801_s2 + $0xc8] sm:$0xff] %v867_v6  ;;  %884 = vst [vmem:[%s1801_s2 + $0x50] sm:$0xff] %v852_v17 }
 0x197   :  { %v769_v29 = vpop.permute.xlu1 %768  ;;  %v799_v59 = vpop.permute.xlu0 %798 }
 0x198   :  { %v853_v44 = vsel %vm16_vm0, %v1562_v54, %v769_v29  ;;  %v868_v7 = vsel %vm16_vm0, %v1550_v23, %v799_v59 }
 0x199   :  { %885 = vst [vmem:[%s1801_s2 + $0x58] sm:$0xff] %v853_v44  ;;  %900 = vst [vmem:[%s1801_s2 + $0xd0] sm:$0xff] %v868_v7 }
 0x19b   :  { %v801_v32 = vpop.permute.xlu1 %800  ;;  %v771_v14 = vpop.permute.xlu0 %770 }
 0x19c   :  { %v869_v10 = vsel %vm16_vm0, %v1564_v55, %v801_v32  ;;  %v854_v13 = vsel %vm16_vm0, %v1579_v25, %v771_v14 }
 0x19d   :  { %901 = vst [vmem:[%s1801_s2 + $0xd8] sm:$0xff] %v869_v10  ;;  %886 = vst [vmem:[%s1801_s2 + $0x60] sm:$0xff] %v854_v13 }
 0x19f   :  { %v773_v23 = vpop.permute.xlu1 %772  ;;  %v803_v54 = vpop.permute.xlu0 %802 }
 0x1a0   :  { %v855_v19 = vsel %vm16_vm0, %v1595_v39, %v773_v23  ;;  %v870_v16 = vsel %vm16_vm0, %v1581_v8, %v803_v54 }
 0x1a1   :  { %887 = vst [vmem:[%s1801_s2 + $0x68] sm:$0xff] %v855_v19  ;;  %902 = vst [vmem:[%s1801_s2 + $0xe0] sm:$0xff] %v870_v16 }
 0x1a3   :  { %v805_v55 = vpop.permute.xlu1 %804  ;;  %v775_v25 = vpop.permute.xlu0 %774 }
 0x1a4   :  { %v871_v20 = vsel %vm16_vm0, %v1597_v42, %v805_v55  ;;  %v856_v34 = vsel %vm16_vm0, %v1611_v36, %v775_v25 }
 0x1a5   :  { %903 = vst [vmem:[%s1801_s2 + $0xe8] sm:$0xff] %v871_v20  ;;  %888 = vst [vmem:[%s1801_s2 + $0x70] sm:$0xff] %v856_v34 }
 0x1a7   :  { %v777_v8 = vpop.permute.xlu1 %776  ;;  %v807_v39 = vpop.permute.xlu0 %806 }
 0x1a8   :  { %v857_v27 = vsel %vm16_vm0, %v1625_v1, %v777_v8  ;;  %v872_v22 = vsel %vm16_vm0, %v1613_v56, %v807_v39 }
 0x1a9   :  { %889 = vst [vmem:[%s1801_s2 + $0x78] sm:$0xff] %v857_v27  ;;  %904 = vst [vmem:[%s1801_s2 + $0xf0] sm:$0xff] %v872_v22 }
 0x1ab   :  { %v809_v42 = vpop.permute.xlu1 %808 }
 0x1ac   :  { %v873_v36 = vsel %vm16_vm0, %v1627_v4, %v809_v42 }
 0x1ad   :  { %905 = vst [vmem:[%s1801_s2 + $0xf8] sm:$0xff] %v873_v36 }

</bundles_post_ra>
